<compile_context>
chip_gen: v6e
topology: v6e:2x2x1
jax: 0.10.0
libtpu: 0.0.40
codegen_flags: <defaults>
</compile_context>

<pallas_src>
import jax
import jax.numpy as jnp
from jax.experimental import pallas as pl
from jax.experimental.pallas import tpu as pltpu


def _interp_weight_matrix(in_size, out_size, align_corners):
    """(out_size, in_size) bilinear interpolation weights, PyTorch semantics."""
    dst = jnp.arange(out_size, dtype=jnp.float32)
    if align_corners:
        scale = 0.0 if out_size <= 1 else (in_size - 1) / (out_size - 1)
        src = dst * jnp.float32(scale)
    else:
        scale = in_size / out_size
        src = jnp.maximum(jnp.float32(scale) * (dst + 0.5) - 0.5, 0.0)
    i0 = jnp.floor(src)
    frac = src - i0
    i0 = i0.astype(jnp.int32)                      # always in [0, in_size-1]
    i1 = jnp.minimum(i0 + 1, in_size - 1)          # clamp (border replicate)
    cols = jnp.arange(in_size, dtype=jnp.int32)[None, :]
    w = (jnp.where(cols == i0[:, None], 1.0 - frac[:, None], 0.0)
         + jnp.where(cols == i1[:, None], frac[:, None], 0.0))
    return w  # float32


def _rescale_kernel(wy_ref, img_ref, wx_ref, out_ref):
    # wy_ref: (TH, H_in)  img_ref: (H_in, W_in)  wx_ref: (W_in, W_out)  out_ref: (TH, W_out)
    a = img_ref[...]
    if a.dtype != wy_ref.dtype:
        a = a.astype(wy_ref.dtype)
    rows = jnp.dot(wy_ref[...], a, preferred_element_type=jnp.float32)      # (TH, W_in)
    rows = rows.astype(wx_ref.dtype)
    out = jnp.dot(rows, wx_ref[...], preferred_element_type=jnp.float32)    # (TH, W_out)
    out_ref[...] = out.astype(out_ref.dtype)


def rescale_pallas(img, factor, interpolation="bilinear", align_corners=None,
                   tile_h=256):
    """Rescale NCHW batch by `factor` (bilinear, align_corners=False by default)."""
    if interpolation != "bilinear":
        # TODO(synk): only 'bilinear' (the module default) is implemented.
        raise NotImplementedError("only bilinear interpolation is implemented")

    B, C, H, W = img.shape
    if isinstance(factor, (int, float)):
        fv = fh = float(factor)
    else:
        fv, fh = float(factor[0]), float(factor[1])
    H_out, W_out = int(H * fv), int(W * fh)
    if (H_out, W_out) == (H, W):
        return img
    ac = bool(align_corners) if align_corners is not None else False

    # bf16 images feed the MXU in bf16 (weights match); everything else in f32.
    compute_dtype = img.dtype if img.dtype == jnp.bfloat16 else jnp.float32
    Wy = _interp_weight_matrix(H, H_out, ac).astype(compute_dtype)      # (H_out, H)
    Wx = _interp_weight_matrix(W, W_out, ac).T.astype(compute_dtype)    # (W, W_out)

    # Tile the output-row dimension so per-step VMEM stays bounded.
    TH = H_out if H_out <= tile_h else tile_h
    n_h = pl.cdiv(H_out, TH)

    img_flat = img.reshape(B * C, H, W)

    out_flat = pl.pallas_call(
        _rescale_kernel,
        out_shape=jax.ShapeDtypeStruct((B * C, H_out, W_out), img.dtype),
        grid=(B * C, n_h),
        in_specs=[
            pl.BlockSpec((TH, H), lambda bc, h: (h, 0)),          # y-weights tile
            pl.BlockSpec((None, H, W), lambda bc, h: (bc, 0, 0)),  # image: resident across h
            pl.BlockSpec((W, W_out), lambda bc, h: (0, 0)),        # x-weights: fetched once
        ],
        out_specs=pl.BlockSpec((None, TH, W_out), lambda bc, h: (bc, h, 0)),
        compiler_params=pltpu.CompilerParams(
            dimension_semantics=("parallel", "parallel"),
        ),
    )(Wy, img_flat, Wx)

    return out_flat.reshape(B, C, H_out, W_out)


def _reference_rescale(img, factor, align_corners=None):
    """Independent pure-JAX (gather-based) reference with the same semantics."""
    B, C, H, W = img.shape
    if isinstance(factor, (int, float)):
        fv = fh = float(factor)
    else:
        fv, fh = float(factor[0]), float(factor[1])
    H_out, W_out = int(H * fv), int(W * fh)
    ac = bool(align_corners) if align_corners is not None else False

    def src_idx(out_size, in_size):
        d = jnp.arange(out_size, dtype=jnp.float32)
        if ac:
            scale = 0.0 if out_size <= 1 else (in_size - 1) / (out_size - 1)
            s = d * jnp.float32(scale)
        else:
            s = jnp.maximum(jnp.float32(in_size / out_size) * (d + 0.5) - 0.5, 0.0)
        i0 = jnp.floor(s).astype(jnp.int32)
        f = s - i0
        i1 = jnp.minimum(i0 + 1, in_size - 1)
        return i0, i1, f

    y0, y1, fy = src_idx(H_out, H)
    x0, x1, fx = src_idx(W_out, W)
    r0 = jnp.take(img, y0, axis=2)
    r1 = jnp.take(img, y1, axis=2)
    rows = r0 * (1.0 - fy)[None, None, :, None] + r1 * fy[None, None, :, None]
    c0 = jnp.take(rows, x0, axis=3)
    c1 = jnp.take(rows, x1, axis=3)
    return c0 * (1.0 - fx) + c1 * fx


if __name__ == "__main__":
    key = jax.random.PRNGKey(0)
    B, C, H, W = 2, 4, 16, 16
    img = jax.random.uniform(key, (B, C, H, W), dtype=jnp.float32)

    # upsample with the module-style tuple factor
    factor = (2.0, 3.0)                    # -> (32, 48)
    out = jax.block_until_ready(rescale_pallas(img, factor))
    ref = _reference_rescale(img, factor)
    assert out.shape == (B, C, 32, 48) and out.dtype == img.dtype
    assert jnp.allclose(out, ref, atol=1e-5, rtol=1e-5), \
        float(jnp.max(jnp.abs(out - ref)))

    # downsample with a scalar factor
    out2 = jax.block_until_ready(rescale_pallas(img, 0.75))
    ref2 = _reference_rescale(img, 0.75)
    assert out2.shape == (B, C, 12, 12)
    assert jnp.allclose(out2, ref2, atol=1e-5, rtol=1e-5), \
        float(jnp.max(jnp.abs(out2 - ref2)))

    # exercise the h-tiled path (multiple output-row tiles, incl. a partial one)
    out3 = jax.block_until_ready(rescale_pallas(img, (1.25, 3.0), tile_h=8))
    ref3 = _reference_rescale(img, (1.25, 3.0))
    assert out3.shape == (B, C, 20, 48)
    assert jnp.allclose(out3, ref3, atol=1e-5, rtol=1e-5), \
        float(jnp.max(jnp.abs(out3 - ref3)))

    print("KERNEL_OK")
</pallas_src>

<mosaic_0001>
module attributes {stable_mosaic.version = 11 : i64} {
  func.func @_rescale_kernel(%arg0: i32, %arg1: i32, %arg2: memref<32x16xf32, #tpu.memory_space<vmem>>, %arg3: memref<1x16x16xf32, #tpu.memory_space<vmem>>, %arg4: memref<16x48xf32, #tpu.memory_space<vmem>>, %arg5: memref<1x32x48xf32, #tpu.memory_space<vmem>>) attributes {dimension_semantics = [#tpu.dimension_semantics<parallel>, #tpu.dimension_semantics<parallel>], iteration_bounds = array<i64: 8, 1>, scalar_prefetch = 0 : i64, scratch_operands = 0 : i64, tpu.core_type = #tpu.core_type<tc>, window_params = [{transform_indices = @transform_0, window_bounds = array<i64: 32, 16>}, {transform_indices = @transform_1, window_bounds = array<i64: 1, 16, 16>}, {pipeline_mode = #tpu.pipeline_mode<synchronous>, transform_indices = @transform_2, window_bounds = array<i64: 16, 48>}, {transform_indices = @transform_3, window_bounds = array<i64: 1, 32, 48>}]} {
    %c0 = arith.constant 0 : index
    %c0_0 = arith.constant 0 : index
    %c0_1 = arith.constant 0 : index
    %0 = vector.load %arg3[%c0, %c0_0, %c0_1] : memref<1x16x16xf32, #tpu.memory_space<vmem>>, vector<1x16x16xf32>
    %1 = vector.shape_cast %0 : vector<1x16x16xf32> to vector<16x16xf32>
    %c0_2 = arith.constant 0 : index
    %c0_3 = arith.constant 0 : index
    %2 = vector.load %arg2[%c0_2, %c0_3] : memref<32x16xf32, #tpu.memory_space<vmem>>, vector<32x16xf32>
    %cst = arith.constant dense<0.000000e+00> : vector<32x16xf32>
    %3 = tpu.matmul %2, %1, %cst {dimension_numbers = #tpu.dot_dimension_numbers<[1], [0], [0], [1], [0, 0, 1, 1], [], []>} : vector<32x16xf32>, vector<16x16xf32>, vector<32x16xf32> -> vector<32x16xf32>
    %c0_4 = arith.constant 0 : index
    %c0_5 = arith.constant 0 : index
    %4 = vector.load %arg4[%c0_4, %c0_5] : memref<16x48xf32, #tpu.memory_space<vmem>>, vector<16x48xf32>
    %cst_6 = arith.constant dense<0.000000e+00> : vector<32x48xf32>
    %5 = tpu.matmul %3, %4, %cst_6 {dimension_numbers = #tpu.dot_dimension_numbers<[1], [0], [0], [1], [0, 0, 1, 1], [], []>} : vector<32x16xf32>, vector<16x48xf32>, vector<32x48xf32> -> vector<32x48xf32>
    %c0_7 = arith.constant 0 : index
    %c0_8 = arith.constant 0 : index
    %c0_9 = arith.constant 0 : index
    %6 = vector.load %arg5[%c0_7, %c0_8, %c0_9] : memref<1x32x48xf32, #tpu.memory_space<vmem>>, vector<1x32x48xf32>
    %7 = vector.shape_cast %6 : vector<1x32x48xf32> to vector<32x48xf32>
    %8 = vector.shape_cast %5 : vector<32x48xf32> to vector<1x32x48xf32>
    tpu.vector_store %arg5[%c0_7, %c0_8, %c0_9], %8 {strides = array<i32>} : memref<1x32x48xf32, #tpu.memory_space<vmem>>, vector<1x32x48xf32>,
    return
  }
  func.func @transform_0(%arg0: i32, %arg1: i32) -> (i32, i32) {
    %c0_i32 = arith.constant 0 : i32
    %c0_i32_0 = arith.constant 0 : i32
    return %arg1, %c0_i32 : i32, i32
  }
  func.func @transform_1(%arg0: i32, %arg1: i32) -> (i32, i32, i32) {
    %c0_i32 = arith.constant 0 : i32
    %c0_i32_0 = arith.constant 0 : i32
    %c0_i32_1 = arith.constant 0 : i32
    return %arg0, %c0_i32, %c0_i32_0 : i32, i32, i32
  }
  func.func @transform_2(%arg0: i32, %arg1: i32) -> (i32, i32) {
    %c0_i32 = arith.constant 0 : i32
    %c0_i32_0 = arith.constant 0 : i32
    %c0_i32_1 = arith.constant 0 : i32
    return %c0_i32, %c0_i32_0 : i32, i32
  }
  func.func @transform_3(%arg0: i32, %arg1: i32) -> (i32, i32, i32) {
    %c0_i32 = arith.constant 0 : i32
    %c0_i32_0 = arith.constant 0 : i32
    return %arg0, %arg1, %c0_i32 : i32, i32, i32
  }
}

</mosaic_0001>

<bundles_post_ra>
// kernel: tpu_custom_call.1
= control target key start
LH: loop header
LB: loop body
LE: loop exit
PB: predicated region body
PF: predicated region fallthrough
CT: control target
= control target key end

     0   :  { %8 = vsyncpa [#allocation3], 0  ;;  %s980_s0 = inlined_call_operand.vmem [shape: f32[32,16], index: 0, kind: input, shape index: {}]   ;;  %s981_s1 = inlined_call_operand.hbm [shape: f32[8,16,16], index: 1, kind: input, shape index: {}]   ;;  %s982_s2 = inlined_call_operand.vmem [shape: f32[16,48], index: 2, kind: input, shape index: {}]   ;;  %s983_s3 = inlined_call_operand.hbm [shape: f32[8,32,48], index: 3, kind: output, shape index: {}]  }
   0x1   :  { %10 = vsyncpa [#allocation3 + $0x1], 0 }
   0x2   :  { %11 = vsyncpa [#allocation4], 0 }
   0x3   :  { %13 = vsyncpa [#allocation4 + $0x1], 0  ;;  %s809_s12 = smov 0   ;;  %s811_s13 = smov 0  }
   0x4   :  { %s813_s14 = smov 0   ;;  %s815_s15 = smov 0  }
   0x5   :  { %s817_s16 = smov 0   ;;  %s819_s17 = smov 0  }
   0x6 LB: > { %s549_s18 = sadd.s32 4294967295, %s781_s17   ;;  %s550_s19 = sadd.s32 4294967294, %s781_s17   ;;  %s781_s17 = sphi %s819_s17, %s19_s17   ;;  %s777_s16 = sphi %s817_s16, %s993_s16   ;;  %s773_s15 = sphi %s815_s15, %s992_s15   ;;  %s769_s14 = sphi %s813_s14, %s991_s14   ;;  %s765_s13 = sphi %s811_s13, %s990_s13   ;;  %s761_s12 = sphi %s809_s12, %s989_s12  }
   0x7   : > { %s31_s20 = sadd.s32 1, %s777_s16  ;;  %s64_s21 = sadd.s32 1, %s769_s14 }
   0x8   : > { %p33_p0 = scmp.ge.s32.totalorder %s31_s20, 8  ;;  %p71_p1 = scmp.ne.s32.totalorder %s769_s14, %s765_s13 }
   0x9   : > { %p72_p2 = scmp.eq.s32.totalorder %s781_s17, 0  ;;  %p77_p3 = scmp.ne.s32.totalorder %s765_s13, %s761_s12 }
   0xa   : > { %s995_s20 = smov (%p33_p0, %s31_s20), 0  ;;  %p78_p5 = scmp.eq.s32.totalorder %s549_s18, 0 }
   0xb   : > { %p850_p4 = por %p72_p2, %p71_p1  ;;  %s61_s23 = ssub.s32 %s777_s16, %s995_s20 }
   0xc   : > { %p124_p6 = scmp.eq.s32.totalorder %s549_s18, 7  ;;  %p62_p7 = scmp.eq.s32.totalorder %s61_s23, 0 }
   0xd   : > { %p856_p8 = por %p78_p5, %p77_p3  ;;  %p130_p10 = scmp.eq.s32.totalorder %s550_s19, 7 }
   0xe   : > { %p860_p9 = por %p124_p6, %p71_p1  ;;  %p619_p12 = scmp.lt.s32.totalorder %s781_s17, 8 }
   0xf   : > { %s865_s26 = scalar_select %p62_p7, %s769_s14, %s64_s21  }
  0x10   : > { %p867_p11 = por %p130_p10, %p77_p3  ;;  %s162_s28 = sand.u32 1, %s769_s14  }
  0x11   : > { %s554_s29 = sshll.u32 %s162_s28, 4  ;;  %s573_s30 = sshll.u32 %s777_s16, 8 }
  0x12   : > { %s172_s6 = scalar_lea.hbm %s981_s1, %s573_s30  ;;  %s166_s7 = scalar_lea.vmem [#allocation2], %s554_s29 }
  0x13   : > { %s173_s8 = sshll.u32 %s166_s7, 4  ;;  %p879_p13 = pnand %p619_p12, %p850_p4  ;;  %s174_s8 = int_to_ptr.vmem [resolvable:$true] %s173_s8 }
  0x14   : > { %p557_p0 = scmp.ge.s32.totalorder %s781_s17, 1  ;;  %s163_s10 = scalar_lea.sflag [#allocation3], %s162_s28 }
  0x15   : > { %p675_p1 = pneg %p879_p13  ;;  %s686_s11 = scalar_lea.vmem %s174_s8, 256 }
  0x16   : > { %p687_p2 = scmp.ne.s32.totalorder %s174_s8, %s686_s11  ;;  %s783_s18 = smov [#allocation2]  }
  0x17   : > { %s691_s19 = sshll.u32 %s783_s18, 4  ;;  %s692_s19 = int_to_ptr.vmem [resolvable:$false] %s691_s19 }
  0x18   : > { %p689_p3 = pnand %p687_p2, %p675_p1  ;;  %s693_s21 = scalar_lea.vmem %s692_s19, 512 }
  0x19   : > { %p694_p6 = scmp.lt.s32.totalorder %s174_s8, %s692_s19  ;;  %p695_p7 = scmp.lt.s32.totalorder %s693_s21, %s686_s11 }
  0x1a   : > { %p690_p5 = pneg %p689_p3 }
  0x1b   : > { %p696_p10 = por %p695_p7, %p694_p6 }
  0x1d   : > { %p697_p4 = pnand %p696_p10, %p690_p5 }
  0x1f   : > { %700 = shalt.err (!%p697_p4)
}
  0x20   : > { %s784_s22 = smov 128   ;;  %s785_s23 = smov 8  }
  0x21   : > { %614 = dma.hbm_to_vmem [thread:$0]  (!%p879_p13), %s172_s6, 256, %s174_s8, %s163_s10, %s784_s22, %s784_s22, %s785_s23  }
  0x22   : > { %p181_p12 = scmp.lt.s32.totalorder %s781_s17, 9 }
  0x24   : > { %p182_p1 = pnand %p557_p0, %p181_p12 }
  0x25   : > { %s892_s28 = sand.u32 (!%p182_p1), 1, %s765_s13  }
  0x26   : > { %185 = sbr.rel (%p182_p1) target bundleno = 458 (0x1ca), region = 32  ;;  %s558_s29 = sshll.u32 (!%p182_p1), %s892_s28, 4 }
  0x27   : > { %s188_s30 = scalar_lea.sflag (!%p182_p1), [#allocation3], %s892_s28  ;;  %s191_s4 = scalar_lea.vmem (!%p182_p1), [#allocation2], %s558_s29 }
  0x2b   : > { %752 = dma.done.wait (%p856_p8), %s188_s30, 256  }
  0x2c   : > { %754 = vsyncadd (%p856_p8), %s188_s30, 4294967040  ;;  %vm232_vm0 = vcmask 130048   ;;  %v227_v0 = vld [vmem:[%s191_s4 + $0x8] sm:$0xff]  ;;  %v226_v1 = vld [vmem:[%s191_s4] sm:$0xff]  ;;  %s559_s23 = sshll.u32 %s892_s28, 5  ;;  %vm429_vm1 = vcmask 392192  }
  0x2d   : > { %v228_v2 = vld [vmem:[%s980_s0] sm:$0xff]  ;;  %587 = vmatprep.subr.mxu0 %v227_v0  ;;  %v229_v3 = vld [vmem:[%s980_s0 + $0x8] sm:$0xff]  ;;  %v230_v4 = vld [vmem:[%s980_s0 + $0x10] sm:$0xff]  ;;  %s218_s29 = scalar_lea.vmem [#allocation5], %s559_s23  ;;  %s574_s4 = sshll.u32 %s773_s15, 9 }
  0x2e   : > { %591 = vmatprep.mubr.msk.f32.mxu0 %vm232_vm0, %v228_v2  ;;  %588 = vmatpush3.msra.mxu0 %v227_v0  ;;  %v231_v5 = vld [vmem:[%s980_s0 + $0x18] sm:$0xff]  ;;  %v331_v6 = vld [vmem:[%s982_s2 + $0x8] sm:$0xff]  ;;  %v330_v7 = vld [vmem:[%s982_s2] sm:$0xff]  ;;  %s450_s30 = sshll.u32 %s218_s29, 4  ;;  %s933_s7 = scalar_lea.hbm %s983_s3, %s574_s4  ;;  %s928_s30 = int_to_ptr.vmem [resolvable:$true] %s450_s30 }
  0x2f   : > { %589 = vmatprep.subr.mxu0 %v226_v1  ;;  %597 = vmatprep.subr.mxu1 %v331_v6  ;;  %s435_s8 = scalar_lea.sflag [#allocation4], %s892_s28  ;;  %s701_s9 = scalar_lea.vmem %s928_s30, 512 }
  0x30   : > { %590 = vmatpush3.msra.mxu0 %v226_v1  ;;  %598 = vmatpush3.msra.mxu1 %v331_v6  ;;  %p702_p8 = scmp.ne.s32.totalorder %s928_s30, %s701_s9  ;;  %s786_s15 = smov [#allocation5]  }
  0x31   : > { %592 = vmatmul.mubr.msk.f32.vlgmr.msra.gmra.mxu0 %vm232_vm0, %v229_v3  ;;  %599 = vmatprep.subr.mxu1 %v330_v7  ;;  %s705_s10 = sshll.u32 %s786_s15, 4  ;;  %s706_s10 = int_to_ptr.vmem [resolvable:$false] %s705_s10 }
  0x32   : > { %594 = vmatprep.mubr.msk.f32.mxu0 %vm232_vm0, %v230_v4  ;;  %600 = vmatpush3.msra.mxu1 %v330_v7  ;;  %p703_p13 = pnand %p702_p8, %p860_p9  ;;  %s707_s24 = scalar_lea.vmem %s706_s10, 1024 }
  0x33   : > { %p708_p2 = scmp.lt.s32.totalorder %s928_s30, %s706_s10  ;;  %p709_p3 = scmp.lt.s32.totalorder %s707_s24, %s701_s9 }
  0x34   : > { %p704_p0 = pneg %p703_p13 }
  0x35   : > { %595 = vmatmul.mubr.msk.f32.gmra.mxu0 %vm232_vm0, %v231_v5  ;;  %p710_p5 = por %p709_p3, %p708_p2 }
  0x37   : > { %p711_p6 = pnand %p710_p5, %p704_p0 }
  0xf1   : > { %v593_v8 = vpop.f32.mrf.mxu0 }
  0xf3   : > { %v311_v9 = vpop.f32.mrf.mxu0 }
  0xf4   : > { %601 = vmatprep.mubr.msk.f32.mxu1 %vm232_vm0, %v311_v9 }
  0xf5   : > { %v596_v10 = vpop.f32.mrf.mxu0  ;;  %602 = vmatmul.mubr.msk.f32.vlgmr.msra.gmra.mxu1 %vm232_vm0, %v593_v8 }
  0xf7   : > { %v321_v11 = vpop.f32.mrf.mxu0 }
  0xf8   : > { %604 = vmatprep.mubr.msk.f32.mxu1 %vm232_vm0, %v321_v11 }
  0xf9   : > { %605 = vmatmul.mubr.msk.f32.gmra.mxu1 %vm232_vm0, %v596_v10 }
 0x1b5   : > { %v603_v12 = vpop.f32.mrf.mxu1 }
 0x1b6   : > { %431 = vst.msk [vmem:[%s218_s29 + $0x8] sm:$0xff] %vm429_vm1, %v603_v12 }
 0x1b7   : > { %v410_v13 = vpop.f32.mrf.mxu1 }
 0x1b8   : > { %430 = vst.msk [vmem:[%s218_s29] sm:$0xff] %vm429_vm1, %v410_v13 }
 0x1b9   : > { %v606_v14 = vpop.f32.mrf.mxu1 }
 0x1ba   : > { %433 = vst.msk [vmem:[%s218_s29 + $0x18] sm:$0xff] %vm429_vm1, %v606_v14 }
 0x1bb   : > { %v420_v15 = vpop.f32.mrf.mxu1 }
 0x1bc   : > { %432 = vst.msk [vmem:[%s218_s29 + $0x10] sm:$0xff] %vm429_vm1, %v420_v15 }
 0x1bd   : > { %714 = shalt.err (!%p711_p6)
}
 0x1be   : > { %s715_s11 = scalar_lea.hbm %s933_s7, 512  ;;  %s719_s21 = scalar_lea.hbm %s983_s3, 4096 }
 0x1bf   : > { %p716_p7 = scmp.ne.s32.totalorder %s933_s7, %s715_s11  ;;  %p720_p12 = scmp.lt.s32.totalorder %s933_s7, %s983_s3 }
 0x1c0   : > { %p721_p1 = scmp.lt.s32.totalorder %s719_s21, %s715_s11 }
 0x1c1   : > { %p717_p10 = pnand %p716_p7, %p860_p9 }
 0x1c2   : > { %p722_p8 = por %p721_p1, %p720_p12 }
 0x1c3   : > { %p718_p4 = pneg %p717_p10 }
 0x1c5   : > { %p723_p13 = pnand %p722_p8, %p718_p4 }
 0x1c7   : > { %726 = shalt.err (!%p723_p13)
}
 0x1c8   : > { %s787_s29 = smov 128   ;;  %s788_s4 = smov 8  }
 0x1c9   : > { %609 = dma.vmem_to_hbm [thread:$0]  (%p860_p9), %s928_s30, 512, %s933_s7, %s435_s8, %s787_s29, %s787_s29, %s788_s4  }
 0x1ca PF: > { %p620_p0 = scmp.ge.s32.totalorder %s781_s17, 2  ;;  %s465_s5 = sand.u32 1, %s761_s12  }
 0x1cb   : > { %s466_s6 = scalar_lea.sflag [#allocation4], %s465_s5 }
 0x1cc   : > { %p616_p2 = pnand %p620_p0, %p867_p11 }
 0x1ce   : > { %p617_p3 = pneg %p616_p2 }
 0x1d0   : > { %756 = dma.done.wait (%p617_p3), %s466_s6, 512  }
 0x1d1   : > { %758 = vsyncadd (%p617_p3), %s466_s6, 4294966784  ;;  %s19_s17 = sadd.s32 1, %s781_s17   ;;  %s989_s12 = smov %s765_s13 }
 0x1d2   : > { %p16_p5 = scmp.ge.s32.totalorder %s19_s17, 10   ;;  %s990_s13 = smov %s769_s14 }
 0x1d3   : > { %s991_s14 = smov %s865_s26  ;;  %s992_s15 = smov %s777_s16 }
 0x1d4   : > { %s993_s16 = smov %s995_s20  ;;  %18 = sbr.rel (!%p16_p5) target bundleno = 6 (0x6), region = 80 }
 0x1d9   :  { %471 = vsyncpa [#allocation3], 1 }
 0x1da   :  { %473 = vsyncpa [#allocation3 + $0x1], 1 }
 0x1db   :  { %474 = vsyncpa [#allocation4], 1 }
 0x1dc   :  { %476 = vsyncpa [#allocation4 + $0x1], 1 }

</bundles_post_ra>
